<compile_context>
chip_gen: v7x
topology: tpu7x:2x2x1
jax: 0.10.0
libtpu: 0.0.40
codegen_flags: <defaults>
</compile_context>

<pallas_src>
import functools

import jax
import jax.numpy as jnp
from jax import lax
from jax.experimental import pallas as pl
from jax.experimental.pallas import tpu as pltpu


def _vanilla_attention_kernel(x_ref, seq_ref, w_ref, b_ref, o_ref, *, use_mask):
    """One grid step == one block of Bt batch rows.

    x_ref  : VMEM f32   [Bt, S, F]
    seq_ref: VMEM int32 [Bt, 1]
    w_ref  : VMEM f32   [1, F]
    b_ref  : SMEM f32   [1, 1]
    o_ref  : VMEM f32   [Bt, F]
    """
    x = x_ref[...]                                        # [Bt, S, F]
    w = w_ref[...]                                        # [1, F]

    # attention_weight = Linear(F, 1)(x).squeeze(-1) -> [Bt, S]
    # VPU multiply + lane (F) reduce. (On v7x this lane-reduce could also be
    # moved to the MXU; kept on the VPU/XLU path here for lowering robustness.)
    scores = jnp.sum(x * w[None, :, :], axis=-1) + b_ref[0, 0]      # [Bt, S]

    if use_mask:
        # mask = cat(ones(seq), -ones(S-seq)) * 9999 ; masked = min(mask, scores)
        seq = seq_ref[...]                                           # [Bt, 1]
        pos = lax.broadcasted_iota(jnp.int32, scores.shape, 1)       # [Bt, S]
        mask = jnp.where(pos < seq, jnp.float32(9999.0), jnp.float32(-9999.0))
        scores = jnp.minimum(mask, scores)                           # [Bt, S]

    # Lane-dense softmax over the sequence axis (exp goes to the EUP slot).
    m = jnp.max(scores, axis=-1, keepdims=True)                      # [Bt, 1]
    p = jnp.exp(scores - m)                                          # [Bt, S]
    denom = jnp.sum(p, axis=-1, keepdims=True)                       # [Bt, 1]

    # Weighted sum over S on the MXU: [Bt,1,S] @ [Bt,S,F] -> [Bt,1,F].
    acc = jnp.einsum(
        "bqs,bsf->bqf", p[:, None, :], x,
        preferred_element_type=jnp.float32,
        precision=lax.Precision.HIGHEST,
    )[:, 0, :]                                                       # [Bt, F]

    # Exact normalization on the tiny [Bt, F] slab (no approx reciprocal).
    o_ref[...] = (acc / denom).astype(o_ref.dtype)


def _pick_block_b(B, S, F, itemsize=4):
    """Batch rows per grid step + the scoped-VMEM limit to request."""
    try:
        vmem_cap = pltpu.get_tpu_info().vmem_capacity_bytes
    except Exception:  # no TPU visible (e.g. CPU interpret mode)
        vmem_cap = 64 * 1024 * 1024
    # Headroom below physical capacity: ~48 MiB on v7x (64 MiB/TC),
    # ~96 MiB on v5e/v6e (128 MiB physical, small default scoped limit).
    vmem_limit = min((vmem_cap * 3) // 4, 96 * 1024 * 1024)

    per_row = max(1, S * F * itemsize)
    # Budget: 2x double-buffered x block + ~2 block-sized elementwise
    # temporaries (x*w product, exp) -> one block <= vmem_limit / 4.
    bt = max(1, (vmem_limit // 4) // per_row)

    if bt >= B:
        # Whole batch fits in one resident block. For larger batches keep the
        # grid >= 2 steps so pipelining overlaps and v7x megacore can split.
        if B >= 16 and B * per_row > 4 * 1024 * 1024:
            half = -(-B // 2)
            bt2 = -(-half // 8) * 8
            if bt2 < B:
                return bt2, vmem_limit
        return B, vmem_limit

    bt = max(8, (bt // 8) * 8)          # out-block sublane alignment
    # TODO(synk): if even an 8-row block exceeds VMEM (very large S*F), add a
    # second "arbitrary" grid axis over S with an online softmax.
    return bt, vmem_limit


@jax.jit
def vanilla_attention(batch_data, weight, bias, batch_seq=None):
    """batch_data: [B, S, F] f32
    weight: [1, F] f32 (torch Linear(F,1).weight layout), bias: [1] f32
    batch_seq: optional [B] int of valid sequence lengths (None == no mask)."""
    B, S, F = batch_data.shape
    bt, vmem_limit = _pick_block_b(B, S, F)
    grid = pl.cdiv(B, bt)
    use_mask = batch_seq is not None

    x = batch_data.astype(jnp.float32)
    if use_mask:
        seq = batch_seq.astype(jnp.int32).reshape(B, 1)
        if grid * bt != B:  # pad only the tiny length vector, never batch_data
            seq = jnp.pad(seq, ((0, grid * bt - B), (0, 0)), constant_values=S)
    else:
        seq = jnp.full((grid * bt, 1), S, dtype=jnp.int32)  # unused by kernel

    w_row = weight.reshape(1, F).astype(jnp.float32)
    b_arr = bias.reshape(1, 1).astype(jnp.float32)

    kernel = functools.partial(_vanilla_attention_kernel, use_mask=use_mask)

    # Memory-bound custom call: tell XLA roughly how heavy it is.
    bytes_accessed = (B * S * F + B * F + B * S + F) * 4
    cost = pl.CostEstimate(flops=4 * B * S * F,
                           transcendentals=B * S,
                           bytes_accessed=bytes_accessed)

    out = pl.pallas_call(
        kernel,
        out_shape=jax.ShapeDtypeStruct((B, F), jnp.float32),
        grid=(grid,),
        in_specs=[
            pl.BlockSpec((bt, S, F), lambda i: (i, 0, 0)),   # batch_data block
            pl.BlockSpec((bt, 1), lambda i: (i, 0)),         # seq lengths
            pl.BlockSpec((1, F), lambda i: (0, 0)),          # weight (resident)
            pl.BlockSpec(memory_space=pltpu.MemorySpace.SMEM),  # bias scalar
        ],
        out_specs=pl.BlockSpec((bt, F), lambda i: (i, 0)),
        compiler_params=pltpu.CompilerParams(
            dimension_semantics=("parallel",),
            vmem_limit_bytes=int(vmem_limit),
        ),
        cost_estimate=cost,
    )(x, seq, w_row, b_arr)
    return out


def _reference(batch_data, weight, bias, batch_seq=None):
    # Pure-JAX reference mirroring the PyTorch forward exactly.
    B, S, F = batch_data.shape
    scores = jnp.einsum("bsf,f->bs", batch_data, weight.reshape(-1)) + bias[0]
    if batch_seq is not None:
        pos = jnp.arange(S)[None, :]
        mask = jnp.where(pos < batch_seq[:, None], 9999.0, -9999.0)
        scores = jnp.minimum(mask, scores)
    attn = jax.nn.softmax(scores, axis=-1)[..., None]                 # [B, S, 1]
    return jnp.sum(batch_data * attn, axis=1)                         # [B, F]


if __name__ == "__main__":
    B, S, F = 2, 8, 32

    key = jax.random.PRNGKey(0)
    k_x, k_w, k_b = jax.random.split(key, 3)

    batch_data = jax.random.normal(k_x, (B, S, F), dtype=jnp.float32)
    # Deterministic init matching torch.nn.Linear(F, 1) parameter shapes.
    bound = 1.0 / (F ** 0.5)
    weight = jax.random.uniform(k_w, (1, F), jnp.float32, -bound, bound)
    bias = jax.random.uniform(k_b, (1,), jnp.float32, -bound, bound)

    # Variable sequence lengths (batch_seq path).
    batch_seq = jnp.array([5, 8], dtype=jnp.int32)
    out = jax.block_until_ready(vanilla_attention(batch_data, weight, bias, batch_seq))
    ref = _reference(batch_data, weight, bias, batch_seq)
    assert out.shape == (B, F)
    assert jnp.allclose(out, ref, atol=1e-3, rtol=1e-3), float(jnp.max(jnp.abs(out - ref)))

    # batch_seq=None path (mask skipped, exactly as in the PyTorch module).
    out2 = jax.block_until_ready(vanilla_attention(batch_data, weight, bias))
    ref2 = _reference(batch_data, weight, bias, None)
    assert jnp.allclose(out2, ref2, atol=1e-3, rtol=1e-3), float(jnp.max(jnp.abs(out2 - ref2)))

    print("KERNEL_OK")
</pallas_src>

<mosaic_0001>
module attributes {stable_mosaic.version = 11 : i64} {
  func.func @_vanilla_attention_kernel(%arg0: i32, %arg1: memref<2x8x32xf32, #tpu.memory_space<vmem>>, %arg2: memref<2x1xi32, #tpu.memory_space<vmem>>, %arg3: memref<1x32xf32, #tpu.memory_space<vmem>>, %arg4: memref<1x1xf32, #tpu.memory_space<smem>>, %arg5: memref<2x32xf32, #tpu.memory_space<vmem>>) attributes {dimension_semantics = [#tpu.dimension_semantics<parallel>], iteration_bounds = array<i64: 1>, scalar_prefetch = 0 : i64, scratch_operands = 0 : i64, tpu.core_type = #tpu.core_type<tc>, window_params = [{transform_indices = @transform_0, window_bounds = array<i64: 2, 8, 32>}, {transform_indices = @transform_1, window_bounds = array<i64: 2, 1>}, {pipeline_mode = #tpu.pipeline_mode<synchronous>, transform_indices = @transform_2, window_bounds = array<i64: 1, 32>}, {transform_indices = @transform_3, window_bounds = array<i64: 1, 1>}, {transform_indices = @transform_4, window_bounds = array<i64: 2, 32>}]} {
    %c0 = arith.constant 0 : index
    %c0_0 = arith.constant 0 : index
    %c0_1 = arith.constant 0 : index
    %0 = vector.load %arg1[%c0, %c0_0, %c0_1] : memref<2x8x32xf32, #tpu.memory_space<vmem>>, vector<2x8x32xf32>
    %c0_2 = arith.constant 0 : index
    %c0_3 = arith.constant 0 : index
    %1 = vector.load %arg3[%c0_2, %c0_3] : memref<1x32xf32, #tpu.memory_space<vmem>>, vector<1x32xf32>
    %2 = vector.shape_cast %1 : vector<1x32xf32> to vector<1x1x32xf32>
    %3 = vector.broadcast %2 : vector<1x1x32xf32> to vector<2x8x32xf32>
    %4 = arith.mulf %0, %3 : vector<2x8x32xf32>
    %cst = arith.constant dense<0.000000e+00> : vector<2x8xf32>
    %5 = vector.multi_reduction <add>, %4, %cst [2] : vector<2x8x32xf32> to vector<2x8xf32>
    %c0_4 = arith.constant 0 : index
    %c0_5 = arith.constant 0 : index
    %6 = memref.load %arg4[%c0_4, %c0_5] : memref<1x1xf32, #tpu.memory_space<smem>>
    %7 = vector.broadcast %6 : f32 to vector<2x8xf32>
    %8 = arith.addf %5, %7 : vector<2x8xf32>
    %c0_6 = arith.constant 0 : index
    %c0_7 = arith.constant 0 : index
    %9 = vector.load %arg2[%c0_6, %c0_7] : memref<2x1xi32, #tpu.memory_space<vmem>>, vector<2x1xi32>
    %10 = tpu.iota {dimensions = array<i32: 1>} : vector<2x8xi32>
    %11 = vector.broadcast %9 : vector<2x1xi32> to vector<2x8xi32>
    %12 = arith.cmpi slt, %10, %11 : vector<2x8xi32>
    %cst_8 = arith.constant 9.999000e+03 : f32
    %cst_9 = arith.constant -9.999000e+03 : f32
    %13 = vector.broadcast %cst_8 : f32 to vector<2x8xf32>
    %14 = vector.broadcast %cst_9 : f32 to vector<2x8xf32>
    %15 = arith.select %12, %13, %14 : vector<2x8xi1>, vector<2x8xf32>
    %16 = arith.minimumf %15, %8 : vector<2x8xf32>
    %cst_10 = arith.constant dense<0xFF800000> : vector<2xf32>
    %17 = vector.multi_reduction <maximumf>, %16, %cst_10 [1] : vector<2x8xf32> to vector<2xf32>
    %18 = vector.shape_cast %17 : vector<2xf32> to vector<2x1xf32>
    %19 = vector.broadcast %18 : vector<2x1xf32> to vector<2x8xf32>
    %20 = arith.subf %16, %19 : vector<2x8xf32>
    %21 = math.exp %20 : vector<2x8xf32>
    %cst_11 = arith.constant dense<0.000000e+00> : vector<2xf32>
    %22 = vector.multi_reduction <add>, %21, %cst_11 [1] : vector<2x8xf32> to vector<2xf32>
    %23 = vector.shape_cast %22 : vector<2xf32> to vector<2x1xf32>
    %24 = vector.shape_cast %21 : vector<2x8xf32> to vector<2x1x8xf32>
    "tpu.trace_start"() <{level = 10 : i32, message = "bqs,bsf->bqf"}> : () -> ()
    %cst_12 = arith.constant dense<0.000000e+00> : vector<2x1x32xf32>
    %25 = tpu.matmul %24, %0, %cst_12 {dimension_numbers = #tpu.dot_dimension_numbers<[2], [1], [1], [2], [0, 0, 0, 1, 1, 2], [0], [0]>, precision = #tpu.contract_precision<fp32>} : vector<2x1x8xf32>, vector<2x8x32xf32>, vector<2x1x32xf32> -> vector<2x1x32xf32>
    "tpu.trace_stop"() : () -> ()
    %26 = vector.shape_cast %25 : vector<2x1x32xf32> to vector<2x32xf32>
    %27 = vector.broadcast %23 : vector<2x1xf32> to vector<2x32xf32>
    %28 = arith.divf %26, %27 : vector<2x32xf32>
    %c0_13 = arith.constant 0 : index
    %c0_14 = arith.constant 0 : index
    %29 = vector.load %arg5[%c0_13, %c0_14] : memref<2x32xf32, #tpu.memory_space<vmem>>, vector<2x32xf32>
    tpu.vector_store %arg5[%c0_13, %c0_14], %28 {strides = array<i32>} : memref<2x32xf32, #tpu.memory_space<vmem>>, vector<2x32xf32>,
    return
  }
  func.func @transform_0(%arg0: i32) -> (i32, i32, i32) {
    %c0_i32 = arith.constant 0 : i32
    %c0_i32_0 = arith.constant 0 : i32
    %c0_i32_1 = arith.constant 0 : i32
    return %arg0, %c0_i32, %c0_i32_0 : i32, i32, i32
  }
  func.func @transform_1(%arg0: i32) -> (i32, i32) {
    %c0_i32 = arith.constant 0 : i32
    %c0_i32_0 = arith.constant 0 : i32
    return %arg0, %c0_i32 : i32, i32
  }
  func.func @transform_2(%arg0: i32) -> (i32, i32) {
    %c0_i32 = arith.constant 0 : i32
    %c0_i32_0 = arith.constant 0 : i32
    %c0_i32_1 = arith.constant 0 : i32
    return %c0_i32, %c0_i32_0 : i32, i32
  }
  func.func @transform_3(%arg0: i32) -> (i32, i32) {
    %c0_i32 = arith.constant 0 : i32
    %c0_i32_0 = arith.constant 0 : i32
    %c0_i32_1 = arith.constant 0 : i32
    return %c0_i32, %c0_i32_0 : i32, i32
  }
  func.func @transform_4(%arg0: i32) -> (i32, i32) {
    %c0_i32 = arith.constant 0 : i32
    %c0_i32_0 = arith.constant 0 : i32
    return %arg0, %c0_i32 : i32, i32
  }
}

</mosaic_0001>

<bundles_post_ra>
// kernel: vanilla_attention.1
= control target key start
LH: loop header
LB: loop body
LE: loop exit
PB: predicated region body
PF: predicated region fallthrough
CT: control target
= control target key end

     0   :  { %10 = vsyncpa [#allocation4], 0  ;;  %s1326_s0 = inlined_call_operand.hbm [shape: f32[2,8,32], index: 0, kind: input, shape index: {}]   ;;  %s1327_s1 = inlined_call_operand.vmem [shape: s32[2,1], index: 1, kind: input, shape index: {}]   ;;  %s1328_s2 = inlined_call_operand.vmem [shape: f32[1,32], index: 2, kind: input, shape index: {}]   ;;  %s1329_s3 = inlined_call_operand.<no memory space> [shape: f32[1,1], index: 3, kind: input, shape index: {}]   ;;  %s1330_s4 = inlined_call_operand.hbm [shape: f32[2,32], index: 4, kind: output, shape index: {}]  }
   0x1   :  { %11 = vsyncpa [#allocation5], 0  ;;  %s1207_s15 = smov [#allocation3]   ;;  %s1159_s19 = scalar_lea.hbm %s1326_s0, 256 }
   0x2   :  { %s17_s16 = sshll.u32 %s1207_s15, 4  ;;  %p1160_p0 = scmp.ne.s32.totalorder %s1326_s0, %s1159_s19  ;;  %s18_s16 = int_to_ptr.vmem [resolvable:$true] %s17_s16 }
   0x3   :  { %p1163_p1 = scmp.lt.u32.totalorder %s1159_s19, %s1326_s0 }
   0x5   :  { %p1165_p2 = pnand %p1163_p1, %p1160_p0 }
   0x7   :  { %1168 = shalt.err (!%p1165_p2)
}
   0x8   :  { %s1169_s24 = scalar_lea.vmem %s18_s16, 256  ;;  %p1174_p4 = scmp.lt.s32.totalorder %s18_s16, %s18_s16 }
   0x9   :  { %p1170_p3 = scmp.ne.s32.totalorder %s18_s16, %s1169_s24  ;;  %p1175_p5 = scmp.lt.s32.totalorder %s1169_s24, %s1169_s24 }
   0xb   :  { %p1176_p6 = por %p1175_p5, %p1174_p4 }
   0xd   :  { %p1177_p7 = pnand %p1176_p6, %p1170_p3 }
   0xf   :  { %1180 = shalt.err (!%p1177_p7)
}
  0x10   :  { %s1208_s25 = smov 128   ;;  %s1209_s26 = smov 8  }
  0x11   :  { %23 = dma.hbm_to_vmem [thread:$0]  %s1326_s0, 256, %s18_s16, [#allocation4], %s1208_s25, %s1208_s25, %s1209_s26  }
  0x12   :  { %1203 = dma.done.wait [#allocation4], 256  }
  0x13   :  { %1204 = vsyncadd [#allocation4], 4294967040  ;;  %v1210_v0 = vmov 0   ;;  %v33_v1 = vld [vmem:[#allocation3] sm:$0xff]  ;;  %vm44_vm0 = vcmask 261120   ;;  %v34_v3 = vld [vmem:[#allocation3 + $0x8] sm:$0xff]  ;;  %v56_v9 = vlaneseq  ;;  %v52_v12 = vstv %s1329_s3 }
  0x14   :  { %1151 = vset.pattern.permute.xlu1 %v1210_v0  ;;  %1152 = vset.pattern.permute.xlu0 %v1210_v0  ;;  %v1037_v2 = vld [vmem:[%s1328_s2] ss:$0 sm:$0xff]  ;;  %vm73_vm2 = vcmask 1041409   ;;  %v1211_v21 = vmov -9999.0   ;;  %vm77_vm3 = vcmask 58368  }
  0x15   :  { %v42_v4 = vmul.f32 %v1037_v2, %v33_v1  ;;  %v43_v5 = vmul.f32 %v1037_v2, %v34_v3  ;;  %v55_v6 = vld [vmem:[%s1327_s1] sm:$0x3]  ;;  %v57_v10 = vand.u32 127, %v56_v9  ;;  %v66_v11 = vshrl.u32 %v56_v9, 7  ;;  %s1215_s1 = smov [#allocation6]  }
  0x16   :  { %59 = vperm.xlu1 %1151, %v55_v6   ;;  %v1264_v26 = vand.u32 4294901760, %v33_v1  ;;  %v1266_v27 = vand.u32 4294901760, %v34_v3  ;;  %v1212_v28 = vmov 0.0   ;;  %vm1213_vm4 = vmmov 0   ;;  %s1028_s2 = sshll.u32 %s1215_s1, 4  ;;  %s1029_s2 = int_to_ptr.vmem [resolvable:$true] %s1028_s2 }
  0x17   :  { %v45_v7 = vsel %vm44_vm0, %v42_v4, 0.0  ;;  %v48_v8 = vsel %vm44_vm0, %v43_v5, 0.0  ;;  %v67_v15 = vsub.s32 %v57_v10, %v66_v11  ;;  %1062 = vmatprep.subr.mxu0 %v1212_v28  ;;  %1064 = vmatprep.mubr.msk.f32.mxu0 %vm1213_vm4, %v1212_v28  ;;  %v1214_v32 = vmov 1966171168   ;;  %s1181_s3 = scalar_lea.vmem %s1029_s2, 32  ;;  %p1186_p9 = scmp.lt.s32.totalorder %s1029_s2, %s1029_s2 }
  0x18   :  { %46 = vadd.xlane.f32.xlu0 %v45_v7  ;;  %1063 = vmatpush3.msra.mxu0 %v1264_v26  ;;  %v89_v33 = vunpack.c.l.s4 %v1214_v32  ;;  %v191_v37 = vsub.f32 %v33_v1, %v1264_v26  ;;  %vm110_vm5 = vcmask 64512   ;;  %v639_v40 = vsub.f32 %v34_v3, %v1266_v27  ;;  %p1182_p8 = scmp.ne.s32.totalorder %s1029_s2, %s1181_s3  ;;  %p1187_p10 = scmp.lt.s32.totalorder %s1181_s3, %s1181_s3 }
  0x19   :  { %1092 = vmatprep.subr.mxu1 %v1212_v28  ;;  %1094 = vmatprep.mubr.msk.f32.mxu1 %vm1213_vm4, %v1212_v28  ;;  %vm1020_vm6 = vcmask 254976  }
  0x1a   :  { %1093 = vmatpush3.msra.mxu1 %v1266_v27  ;;  %1067 = vmatprep.subr.mxu0 %v1212_v28  ;;  %v90_v34 = vunpack.c.0.s8 %v89_v33  ;;  %v192_v45 = vand.u32 4294901760, %v191_v37  ;;  %v640_v48 = vand.u32 4294901760, %v639_v40  ;;  %p1188_p11 = por %p1187_p10, %p1186_p9 }
  0x1b   :  { %1097 = vmatprep.subr.mxu1 %v1212_v28 }
  0x1c   :  { %49 = vadd.xlane.f32.xlu0 %v48_v8  ;;  %v93_v35 = vsub.s32 %v90_v34, %v66_v11  ;;  %v193_v51 = vsub.f32 %v191_v37, %v192_v45  ;;  %v641_v54 = vsub.f32 %v639_v40, %v640_v48  ;;  %p1189_p12 = pnand %p1188_p11, %p1182_p8 }
  0x1e   :  { %v194_v57 = vand.u32 4294901760, %v193_v51  ;;  %v642_v60 = vand.u32 4294901760, %v641_v54 }
  0x95   :  { %v60_v14 = vpop.permute.xlu1 %59 }
  0x96   :  { %vm61_vm1 = vcmp.lt.s32.totalorder %v57_v10, %v60_v14 }
  0x97   :  { %v62_v22 = vsel %vm61_vm1, 9999.0, %v1211_v21 }
  0xa5   :  { %v47_v13 = vpop.xlane.xlu0 %46 }
  0xa6   :  { %v53_v16 = vadd.f32 %v52_v12, %v47_v13 }
  0xa8   :  { %v68_v19 = vrot.slane %v53_v16, %v67_v15 }
  0xa9   :  { %v50_v17 = vpop.xlane.xlu0 %49 }
  0xaa   :  { %v54_v18 = vadd.f32 %v52_v12, %v50_v17 }
  0xac   :  { %v72_v20 = vrot.slane %v54_v18, %v67_v15 }
  0xae   :  { %v74_v23 = vsel %vm73_vm2, %v72_v20, %v68_v19 }
  0xaf   :  { %v76_v24 = vmin.f32 %v62_v22, %v74_v23 }
  0xb1   :  { %v78_v25 = vsel %vm77_vm3, %v76_v24, -inf }
  0xb2   :  { %79 = vmax.xlane.f32.xlu1 %v78_v25 }
 0x13f   :  { %v80_v29 = vpop.xlane.xlu1 %79 }
 0x140   :  { %v81_v30 = vsub.f32 %v76_v24, %v80_v29 }
 0x142   :  { %v82_v31 = vmul.f32 1.442695, %v81_v30 }
 0x144   :  { %1153 = vpow2.f32 %v82_v31 }
 0x14e   :  { %v1154_v36 = vpop.eup %1153 }
 0x14f   :  { %v94_v38 = vrot.slane %v1154_v36, %v93_v35  ;;  %v84_v39 = vsel %vm77_vm3, %v1154_v36, 0.0 }
 0x150   :  { %85 = vadd.xlane.f32.xlu0 %v84_v39 }
 0x151   :  { %v102_v41 = vrot.slane %v94_v38, %v93_v35  ;;  %v95_v42 = vcombine.high %v94_v38, %v94_v38 }
 0x153   :  { %v111_v43 = vsel %vm110_vm5, %v102_v41, 0  ;;  %v109_v44 = vrot.slane %v95_v42, %v93_v35 }
 0x154   :  { %v179_v46 = vand.u32 4294901760, %v111_v43 }
 0x155   :  { %v559_v47 = vsel %vm110_vm5, %v109_v44, 0 }
 0x156   :  { %v180_v49 = vsub.f32 %v111_v43, %v179_v46  ;;  %v627_v50 = vand.u32 4294901760, %v559_v47 }
 0x158   :  { %v181_v52 = vand.u32 4294901760, %v180_v49  ;;  %v628_v53 = vsub.f32 %v559_v47, %v627_v50 }
 0x15a   :  { %v182_v55 = vsub.f32 %v180_v49, %v181_v52  ;;  %v629_v56 = vand.u32 4294901760, %v628_v53 }
 0x15c   :  { %v183_v58 = vand.u32 4294901760, %v182_v55  ;;  %v630_v59 = vsub.f32 %v628_v53, %v629_v56 }
 0x15e   :  { %1065 = vmatmul.mubr.f32.vlgmr.msra.gmra.mrb[0].mxu0 %v183_v58  ;;  %v631_v61 = vand.u32 4294901760, %v630_v59 }
 0x15f   :  { %1068 = vmatpush3.msra.mxu0 %v194_v57  ;;  %1069 = vmatprep.mubr.msk.f32.mxu0 %vm1213_vm4, %v1212_v28 }
 0x160   :  { %1095 = vmatmul.mubr.f32.vlgmr.msra.gmra.mrb[0].mxu1 %v631_v61  ;;  %1072 = vmatprep.subr.mxu0 %v1212_v28 }
 0x161   :  { %1098 = vmatpush3.msra.mxu1 %v642_v60  ;;  %1099 = vmatprep.mubr.msk.f32.mxu1 %vm1213_vm4, %v1212_v28 }
 0x162   :  { %1102 = vmatprep.subr.mxu1 %v1212_v28 }
 0x166   :  { %1070 = vmatmul.mubr.f32.vlgmr.msra.gmra.mrb[0].mxu0 %v179_v46 }
 0x167   :  { %1073 = vmatpush3.msra.mxu0 %v191_v37  ;;  %1074 = vmatprep.mubr.msk.f32.mxu0 %vm1213_vm4, %v1212_v28 }
 0x168   :  { %1100 = vmatmul.mubr.f32.vlgmr.msra.gmra.mrb[0].mxu1 %v627_v50  ;;  %1077 = vmatprep.subr.mxu0 %v1212_v28 }
 0x169   :  { %1103 = vmatpush3.msra.mxu1 %v639_v40  ;;  %1104 = vmatprep.mubr.msk.f32.mxu1 %vm1213_vm4, %v1212_v28 }
 0x16a   :  { %1107 = vmatprep.subr.mxu1 %v1212_v28 }
 0x16e   :  { %1075 = vmatmul.mubr.f32.vlgmr.msra.gmra.mrb[0].mxu0 %v180_v49 }
 0x16f   :  { %1078 = vmatpush3.msra.mxu0 %v1264_v26  ;;  %1079 = vmatprep.mubr.msk.f32.mxu0 %vm1213_vm4, %v1212_v28 }
 0x170   :  { %1105 = vmatmul.mubr.f32.vlgmr.msra.gmra.mrb[0].mxu1 %v628_v53  ;;  %1082 = vmatprep.subr.mxu0 %v1212_v28 }
 0x171   :  { %1108 = vmatpush3.msra.mxu1 %v1266_v27  ;;  %1109 = vmatprep.mubr.msk.f32.mxu1 %vm1213_vm4, %v1212_v28 }
 0x172   :  { %1112 = vmatprep.subr.mxu1 %v1212_v28 }
 0x176   :  { %1080 = vmatmul.mubr.f32.vlgmr.msra.gmra.mrb[0].mxu0 %v181_v52 }
 0x177   :  { %1083 = vmatpush3.msra.mxu0 %v192_v45  ;;  %1084 = vmatprep.mubr.msk.f32.mxu0 %vm1213_vm4, %v1212_v28 }
 0x178   :  { %1110 = vmatmul.mubr.f32.vlgmr.msra.gmra.mrb[0].mxu1 %v629_v56  ;;  %1087 = vmatprep.subr.mxu0 %v1212_v28 }
 0x179   :  { %1113 = vmatpush3.msra.mxu1 %v640_v48  ;;  %1114 = vmatprep.mubr.msk.f32.mxu1 %vm1213_vm4, %v1212_v28 }
 0x17a   :  { %1117 = vmatprep.subr.mxu1 %v1212_v28 }
 0x17e   :  { %1085 = vmatmul.mubr.f32.vlgmr.msra.gmra.mrb[0].mxu0 %v179_v46 }
 0x17f   :  { %1088 = vmatpush3.msra.mxu0 %v1264_v26  ;;  %1089 = vmatprep.mubr.msk.f32.mxu0 %vm1213_vm4, %v1212_v28 }
 0x180   :  { %1115 = vmatmul.mubr.f32.vlgmr.msra.gmra.mrb[0].mxu1 %v627_v50 }
 0x181   :  { %1118 = vmatpush3.msra.mxu1 %v1266_v27  ;;  %1119 = vmatprep.mubr.msk.f32.mxu1 %vm1213_vm4, %v1212_v28 }
 0x186   :  { %1090 = vmatmul.mubr.f32.vlgmr.msra.gmra.mrb[0].mxu0 %v179_v46 }
 0x188   :  { %1120 = vmatmul.mubr.f32.vlgmr.msra.gmra.mrb[0].mxu1 %v627_v50 }
 0x1dd   :  { %v86_v62 = vpop.xlane.xlu0 %85 }
 0x1de   :  { %v1008_v63 = vrot.slane %v86_v62, 1 }
 0x1e0   :  { %1155 = vrcp.f32 %v1008_v63 }
 0x1e1   :  { %1157 = vrcp.f32 %v86_v62 }
 0x1ea   :  { %v1156_v2 = vpop.eup %1155 }
 0x1eb   :  { %v1158_v6 = vpop.eup %1157 }
 0x259   :  { %v555_v0 = vpop.f32.mrb[0].mxu0 }
 0x25a   :  { %v1091_v1 = vpop.f32.mrb[1].mxu0  ;;  %v1012_v7 = vmul.f32 %v1158_v6, %v555_v0 }
 0x25b   :  { %v1003_v3 = vpop.f32.mrb[0].mxu1 }
 0x25c   :  { %v1014_v4 = vmul.f32 %v1156_v2, %v1003_v3  ;;  %v1121_v5 = vpop.f32.mrb[1].mxu1 }
 0x25e   :  { %v1017_v8 = vrot.slane %v1014_v4, 7 }
 0x260   :  { %v1018_v9 = vsel %vm73_vm2, %v1017_v8, %v1012_v7 }
 0x261   :  { %1021 = vst.msk [vmem:[#allocation6] sm:$0x3] %vm1020_vm6, %v1018_v9 }
 0x262   :  { %1192 = shalt.err (!%p1189_p12)
}
 0x263   :  { %s1193_s10 = scalar_lea.hbm %s1330_s4, 32 }
 0x264   :  { %p1194_p13 = scmp.ne.s32.totalorder %s1330_s4, %s1193_s10  ;;  %p1197_p0 = scmp.lt.u32.totalorder %s1193_s10, %s1330_s4 }
 0x266   :  { %p1199_p1 = pnand %p1197_p0, %p1194_p13 }
 0x268   :  { %1202 = shalt.err (!%p1199_p1)
}
 0x269   :  { %1031 = dma.vmem_to_hbm [thread:$0]  %s1029_s2, 32, %s1330_s4, [#allocation5]  }
 0x26a   :  { %1205 = dma.done.wait [#allocation5], 32  }
 0x26b   :  { %1206 = vsyncadd [#allocation5], 4294967264 }
 0x26c   :  { %1035 = vsyncpa [#allocation4], 1 }
 0x26d   :  { %1036 = vsyncpa [#allocation5], 1 }

</bundles_post_ra>
